<compile_context>
chip_gen: v7x
topology: tpu7x:2x2x1
jax: 0.10.0
libtpu: 0.0.40
codegen_flags: <defaults>
</compile_context>

<pallas_src>
import functools

import jax
import jax.numpy as jnp
from jax.experimental import pallas as pl
from jax.experimental.pallas import tpu as pltpu

LANES = 128      # vreg lane width
SUBLANES = 8     # f32 sublanes per native (8, 128) tile


def linear_kernel(w_ref, b_ref, x_ref, o_ref):
    # w_ref/b_ref: SMEM (1,) f32 scalars; x_ref/o_ref: VMEM (row_block, 128).
    w = w_ref[0]                       # scalar read from SMEM
    b = b_ref[0]                       # scalar read from SMEM
    # Pure VPU fused multiply-add in f32; lane-dense, single unmasked store.
    o_ref[...] = (x_ref[...].astype(jnp.float32) * w + b).astype(o_ref.dtype)


@functools.partial(jax.jit, static_argnames=("tile_rows",))
def linear_forward(x, w, b, *, tile_rows=512):
    """y = x @ w.T + b for nn.Linear(1, 1). x: (N, 1), w: (1, 1), b: (1,)."""
    N, in_f = x.shape
    out_f = w.shape[0]
    assert in_f == 1 and out_f == 1, "kernel is specialized for Linear(1, 1)"

    # Lane-dense padded view: (N, 1) -> (rows, 128) with rows % row_block == 0.
    rows_needed = pl.cdiv(N, LANES)
    if rows_needed <= tile_rows:
        # Tiny/medium N: one gridless block, padded to full (8, 128) tiles.
        row_block = pl.cdiv(rows_needed, SUBLANES) * SUBLANES
        rows = row_block
        grid = None
    else:
        # Large N: 1-D grid of (tile_rows, 128) blocks (pipelined DMA).
        row_block = tile_rows
        rows = pl.cdiv(rows_needed, row_block) * row_block
        grid = (rows // row_block,)

    n_pad = rows * LANES
    x_dense = jnp.pad(x.reshape(N), (0, n_pad - N)).reshape(rows, LANES)

    w_s = w.reshape(1).astype(jnp.float32)   # scalars for SMEM
    b_s = b.reshape(1).astype(jnp.float32)

    common = dict(
        out_shape=jax.ShapeDtypeStruct((rows, LANES), x.dtype),
        input_output_aliases={2: 0},          # reuse padded-x HBM buffer for y
        cost_estimate=pl.CostEstimate(
            flops=2 * n_pad,
            transcendentals=0,
            bytes_accessed=2 * 4 * n_pad,     # padded read + write; w/b in SMEM
        ),
    )

    if grid is None:
        y_dense = pl.pallas_call(
            linear_kernel,
            in_specs=[
                pl.BlockSpec(memory_space=pltpu.MemorySpace.SMEM),   # w scalar
                pl.BlockSpec(memory_space=pltpu.MemorySpace.SMEM),   # b scalar
                pl.BlockSpec((rows, LANES), lambda: (0, 0)),          # x (VMEM)
            ],
            out_specs=pl.BlockSpec((rows, LANES), lambda: (0, 0)),
            **common,
        )(w_s, b_s, x_dense)
    else:
        y_dense = pl.pallas_call(
            linear_kernel,
            grid=grid,
            in_specs=[
                pl.BlockSpec(memory_space=pltpu.MemorySpace.SMEM),   # w scalar
                pl.BlockSpec(memory_space=pltpu.MemorySpace.SMEM),   # b scalar
                pl.BlockSpec((row_block, LANES), lambda i: (i, 0)),   # x tiles
            ],
            out_specs=pl.BlockSpec((row_block, LANES), lambda i: (i, 0)),
            compiler_params=pltpu.CompilerParams(
                dimension_semantics=("parallel",),   # shard rows across TCs
            ),
            **common,
        )(w_s, b_s, x_dense)

    # Slice the padded tail back off so padded (b-filled) rows never leak out.
    return y_dense.reshape(n_pad)[:N].reshape(N, out_f)


if __name__ == "__main__":
    key = jax.random.PRNGKey(0)
    kx, kw, kb = jax.random.split(key, 3)

    # Input consistent with the demo: x = np.random.rand(100, 1)
    N, IN_F, OUT_F = 100, 1, 1
    x = jax.random.uniform(kx, (N, IN_F), dtype=jnp.float32)

    # Deterministic nn.Linear(1, 1)-style init: U(-1/sqrt(in), 1/sqrt(in))
    bound = 1.0 / (IN_F ** 0.5)
    w = jax.random.uniform(kw, (OUT_F, IN_F), minval=-bound, maxval=bound,
                           dtype=jnp.float32)
    b = jax.random.uniform(kb, (OUT_F,), minval=-bound, maxval=bound,
                           dtype=jnp.float32)

    # Gridless (tiny-N) path.
    y = linear_forward(x, w, b)
    jax.block_until_ready(y)
    y_ref = x @ w.T + b
    assert y.shape == (N, OUT_F)
    assert jnp.allclose(y, y_ref, atol=1e-6, rtol=1e-6)

    # Also exercise the tiled/pipelined grid path (small tile_rows so a modest
    # N triggers the 1-D grid) and check correctness.
    N2 = 3000
    x2 = jax.random.uniform(jax.random.PRNGKey(1), (N2, IN_F),
                            dtype=jnp.float32)
    y2 = linear_forward(x2, w, b, tile_rows=8)
    jax.block_until_ready(y2)
    y2_ref = x2 @ w.T + b
    assert y2.shape == (N2, OUT_F)
    assert jnp.allclose(y2, y2_ref, atol=1e-6, rtol=1e-6)

    print("KERNEL_OK")
</pallas_src>

<mosaic_0001>
module attributes {stable_mosaic.version = 11 : i64} {
  func.func @linear_kernel(%arg0: memref<1xf32, #tpu.memory_space<smem>>, %arg1: memref<1xf32, #tpu.memory_space<smem>>, %arg2: memref<8x128xf32, #tpu.memory_space<vmem>>, %arg3: memref<8x128xf32, #tpu.memory_space<vmem>>) attributes {dimension_semantics = [], scalar_prefetch = 0 : i64, scratch_operands = 0 : i64, tpu.core_type = #tpu.core_type<tc>} {
    %c0 = arith.constant 0 : index
    %0 = memref.load %arg0[%c0] : memref<1xf32, #tpu.memory_space<smem>>
    %c0_0 = arith.constant 0 : index
    %1 = memref.load %arg1[%c0_0] : memref<1xf32, #tpu.memory_space<smem>>
    %c0_1 = arith.constant 0 : index
    %c0_2 = arith.constant 0 : index
    %2 = vector.load %arg2[%c0_1, %c0_2] : memref<8x128xf32, #tpu.memory_space<vmem>>, vector<8x128xf32>
    %3 = vector.broadcast %0 : f32 to vector<8x128xf32>
    %4 = arith.mulf %2, %3 : vector<8x128xf32>
    %5 = vector.broadcast %1 : f32 to vector<8x128xf32>
    %6 = arith.addf %4, %5 : vector<8x128xf32>
    %c0_3 = arith.constant 0 : index
    %c0_4 = arith.constant 0 : index
    %7 = vector.load %arg3[%c0_3, %c0_4] : memref<8x128xf32, #tpu.memory_space<vmem>>, vector<8x128xf32>
    tpu.vector_store %arg3[%c0_3, %c0_4], %6 {strides = array<i32>} : memref<8x128xf32, #tpu.memory_space<vmem>>, vector<8x128xf32>,
    return
  }
}

</mosaic_0001>

<bundles_post_ra>
// kernel: linear_forward.1
= control target key start
LH: loop header
LB: loop body
LE: loop exit
PB: predicated region body
PF: predicated region fallthrough
CT: control target
= control target key end

     0   :  { %s60_s0 = inlined_call_operand.<no memory space> [shape: f32[1], index: 0, kind: input, shape index: {}]   ;;  %s61_s1 = inlined_call_operand.<no memory space> [shape: f32[1], index: 1, kind: input, shape index: {}]   ;;  %s62_s2 = inlined_call_operand.vmem [shape: f32[8,128], index: 2, kind: input, shape index: {}, may-alias: {2,3}]   ;;  %s63_s3 = inlined_call_operand.vmem [shape: f32[8,128], index: 3, kind: output, shape index: {}, may-alias: {2,3}]  }
   0x1   :  { %v18_v0 = vld [vmem:[%s62_s2] sm:$0xff]  ;;  %v19_v1 = vstv %s60_s0  ;;  %v21_v2 = vstv %s61_s1 }
   0x2   :  { %v20_v3 = vmul.f32 %v19_v1, %v18_v0 }
   0x4   :  { %v22_v4 = vadd.f32 %v21_v2, %v20_v3 }
   0x6   :  { %23 = vst [vmem:[%s63_s3] sm:$0xff] %v22_v4 }

</bundles_post_ra>
